<compile_context>
chip_gen: v6e
topology: v6e:2x2x1
jax: 0.10.0
libtpu: 0.0.40
codegen_flags: <defaults>
</compile_context>

<pallas_src>
import functools

import jax
import jax.numpy as jnp
from jax.experimental import pallas as pl
from jax.experimental.pallas import tpu as pltpu

LANES = 128
_ACC_ROWS = 8            # lane-dense accumulator slab; rows 0..4 are used
_BLOCK_BUDGET = 8 << 20  # ~8 MiB of (x + y) block per pipeline buffer


def _loss_sums_kernel(x_ref, y_ref, acc_ref):
    """Accumulates 5 partial sums into a resident (1, 8, 128) VMEM block.

    acc rows: 0 = sum(x*y), 1 = sum(x), 2 = sum(y_broadcast), 3 = sum(bce
    terms), 4 = sum(channel variance). Every lane of a row holds the same
    value; the wrapper reads lane 0.
    """
    i = pl.program_id(1)  # inner spatial ("arbitrary") axis

    @pl.when(i == 0)
    def _init():
        acc_ref[...] = jnp.zeros_like(acc_ref)

    x = x_ref[...].astype(jnp.float32)      # (B, N, T)
    y = y_ref[...].astype(jnp.float32)      # (B, 1, T) or (B, N, T)
    n = x.shape[1]

    def rsum(a):  # full reduce, kept at rank 2 (no rank-0 on TPU)
        return jnp.sum(a, axis=(0, 1, 2), keepdims=True).reshape(1, 1)

    # Per-voxel channel sum (reused by dice + variance).
    s1 = jnp.sum(x, axis=1, keepdims=True)          # (B, 1, T)

    # Dice pieces (y broadcasts over the channel axis when it has 1 channel).
    if y.shape[1] == 1:
        p_inter = rsum(s1 * y)
        p_sy = rsum(y) * float(n)
    else:
        p_inter = rsum(x * y)
        p_sy = rsum(y)
    p_sx = rsum(s1)

    # BCE pieces (x is post-sigmoid; torch clamps the log terms at -100).
    log_x = jnp.maximum(jnp.log(x), -100.0)
    log_1mx = jnp.maximum(jnp.log(1.0 - x), -100.0)
    p_bce = rsum(-(y * log_x + (1.0 - y) * log_1mx))

    # Uncertainty pieces: unbiased variance over the channel axis (dim 1).
    if n > 1:
        mean = s1 * (1.0 / n)
        d = x - mean
        p_var = rsum(d * d) * (1.0 / (n - 1))
    else:
        # TODO(synk): torch.var(unbiased=True) is NaN for a single channel;
        # we guard with 0 instead of reproducing the NaN.
        p_var = jnp.zeros((1, 1), jnp.float32)

    acc_ref[:, 0:1, :] += p_inter
    acc_ref[:, 1:2, :] += p_sx
    acc_ref[:, 2:3, :] += p_sy
    acc_ref[:, 3:4, :] += p_bce
    acc_ref[:, 4:5, :] += p_var


def _choose_tile(S, x_bytes_per_lane, y_bytes_per_lane):
    """Largest lane tile (multiple of 128 dividing S) within the VMEM budget."""
    n128 = S // LANES
    cap = max(1, _BLOCK_BUDGET // ((x_bytes_per_lane + y_bytes_per_lane) * LANES))
    tile_blocks = 1
    for cand in range(min(n128, cap), 0, -1):
        if n128 % cand == 0:
            tile_blocks = cand
            break
    return tile_blocks * LANES


def _loss_sums(xr, yr):
    """xr: (B, N, S), yr: (B, 1 or N, S) with S % 128 == 0. Returns 5 scalars."""
    B, N, S = xr.shape
    Ny = yr.shape[1]

    tile_s = _choose_tile(S,
                          B * N * jnp.dtype(xr.dtype).itemsize,
                          B * Ny * jnp.dtype(yr.dtype).itemsize)
    s_blocks = S // tile_s
    # Leading "parallel" axis: lets v7x's two TensorCores split the spatial
    # blocks; it degenerates to a sequential loop on single-TC v5e/v6e.
    n_par = 2 if (s_blocks % 2 == 0 and s_blocks >= 2) else 1
    inner = s_blocks // n_par

    x_spec = pl.BlockSpec((B, N, tile_s), lambda p, i: (0, 0, p * inner + i))
    y_spec = pl.BlockSpec((B, Ny, tile_s), lambda p, i: (0, 0, p * inner + i))
    out_spec = pl.BlockSpec((1, _ACC_ROWS, LANES), lambda p, i: (p, 0, 0))

    acc = pl.pallas_call(
        _loss_sums_kernel,
        grid=(n_par, inner),
        in_specs=[x_spec, y_spec],
        out_specs=out_spec,
        out_shape=jax.ShapeDtypeStruct((n_par, _ACC_ROWS, LANES), jnp.float32),
        compiler_params=pltpu.CompilerParams(
            dimension_semantics=("parallel", "arbitrary"),
            vmem_limit_bytes=48 * 1024 * 1024,
        ),
    )(xr, yr)

    sums = jnp.sum(acc[:, :, 0], axis=0)   # (8,) — every lane of a row is equal
    return sums[0], sums[1], sums[2], sums[3], sums[4]


@functools.partial(jax.jit, static_argnames=("mode",))
def all_loss(x, y, mode="uncertainty", weight=1.0, smooth=1.0):
    """Pallas implementation of AllLoss.forward.

    x: (batch, n, h, w, d) post-sigmoid probabilities
    y: (batch, 1, h, w, d) or (batch, n, h, w, d) targets
    """
    B, N = x.shape[0], x.shape[1]
    Ny = y.shape[1]

    S = 1
    for d in x.shape[2:]:
        S *= d

    # Keep y un-broadcast (the kernel broadcasts it over channels on the VPU)
    # and keep original dtypes (the kernel casts to f32 in VMEM).
    xr = x.reshape(B, N, S)
    yr = y.reshape(B, Ny, S)

    # Zero-pad the flattened spatial axis to a multiple of 128; zero padding
    # contributes exactly 0 to all five partial sums.
    pad = (-S) % LANES
    if pad:
        xr = jnp.pad(xr, ((0, 0), (0, 0), (0, pad)))
        yr = jnp.pad(yr, ((0, 0), (0, 0), (0, pad)))

    inter, sx, sy, bce_sum, var_sum = _loss_sums(xr, yr)

    total = float(B * N * S)                      # real (unpadded) counts
    dice = 1.0 - (2.0 * inter + smooth) / (sx + sy + smooth)
    bce = bce_sum / total
    loss = bce + dice

    if mode == "dicebce":
        return loss, dice, bce
    # mode == 'uncertainty'
    uncertainty = (var_sum / float(B * S)) * weight
    loss = loss + uncertainty
    return loss, dice, bce, uncertainty


def _ref_all_loss(x, y, mode="uncertainty", weight=1.0, smooth=1.0):
    """Pure-JAX reference matching the PyTorch semantics."""
    if y.shape[1] < x.shape[1]:
        y = jnp.broadcast_to(y, x.shape)
    xf = x.reshape(-1).astype(jnp.float32)
    yf = y.reshape(-1).astype(jnp.float32)
    inter = jnp.sum(xf * yf)
    dice = 1.0 - (2.0 * inter + smooth) / (jnp.sum(xf) + jnp.sum(yf) + smooth)
    bce = jnp.mean(-(yf * jnp.maximum(jnp.log(xf), -100.0)
                     + (1.0 - yf) * jnp.maximum(jnp.log(1.0 - xf), -100.0)))
    loss = bce + dice
    if mode == "dicebce":
        return loss, dice, bce
    unc = jnp.mean(jnp.var(x.astype(jnp.float32), axis=1, ddof=1)) * weight
    return loss + unc, dice, bce, unc


if __name__ == "__main__":
    key = jax.random.PRNGKey(0)
    kx, ky = jax.random.split(key)

    # Case 1: uncertainty mode, 128-aligned spatial size (2*4*512 elements).
    B, N, H, W, D = 2, 4, 8, 8, 8
    x = jax.nn.sigmoid(jax.random.normal(kx, (B, N, H, W, D), jnp.float32))
    y = (jax.random.uniform(ky, (B, 1, H, W, D)) > 0.5).astype(jnp.float32)

    out = all_loss(x, y, mode="uncertainty", weight=1.0)
    out = jax.block_until_ready(out)
    ref = _ref_all_loss(x, y, mode="uncertainty", weight=1.0)
    for got, want in zip(out, ref):
        assert jnp.allclose(got, want, rtol=1e-5, atol=1e-5), (got, want)

    # Case 2: dicebce mode with a non-128-multiple spatial size (padding path).
    x2 = jax.nn.sigmoid(jax.random.normal(kx, (1, 3, 5, 7, 6), jnp.float32))
    y2 = (jax.random.uniform(ky, (1, 1, 5, 7, 6)) > 0.5).astype(jnp.float32)
    out2 = jax.block_until_ready(all_loss(x2, y2, mode="dicebce"))
    ref2 = _ref_all_loss(x2, y2, mode="dicebce")
    for got, want in zip(out2, ref2):
        assert jnp.allclose(got, want, rtol=1e-5, atol=1e-5), (got, want)

    print("KERNEL_OK")
</pallas_src>

<mosaic_0001>
module attributes {stable_mosaic.version = 11 : i64} {
  func.func @_loss_sums_kernel(%arg0: i32, %arg1: i32, %arg2: memref<2x4x512xf32, #tpu.memory_space<vmem>>, %arg3: memref<2x1x512xf32, #tpu.memory_space<vmem>>, %arg4: memref<1x8x128xf32, #tpu.memory_space<vmem>>) attributes {dimension_semantics = [#tpu.dimension_semantics<parallel>, #tpu.dimension_semantics<arbitrary>], iteration_bounds = array<i64: 1, 1>, scalar_prefetch = 0 : i64, scratch_operands = 0 : i64, tpu.core_type = #tpu.core_type<tc>, window_params = [{transform_indices = @transform_0, window_bounds = array<i64: 2, 4, 512>}, {transform_indices = @transform_1, window_bounds = array<i64: 2, 1, 512>}, {transform_indices = @transform_2, window_bounds = array<i64: 1, 8, 128>}]} {
    %c0_i32 = arith.constant 0 : i32
    %0 = arith.cmpi eq, %arg1, %c0_i32 : i32
    %1 = arith.extui %0 : i1 to i32
    %c0_i32_0 = arith.constant 0 : i32
    %2 = arith.cmpi ne, %1, %c0_i32_0 : i32
    scf.if %2 {
      %cst_45 = arith.constant 0.000000e+00 : f32
      %89 = vector.broadcast %cst_45 : f32 to vector<1x8x128xf32>
      %c0_46 = arith.constant 0 : index
      %c0_47 = arith.constant 0 : index
      %c0_48 = arith.constant 0 : index
      %90 = vector.load %arg4[%c0_46, %c0_47, %c0_48] : memref<1x8x128xf32, #tpu.memory_space<vmem>>, vector<1x8x128xf32>
      tpu.vector_store %arg4[%c0_46, %c0_47, %c0_48], %89 {strides = array<i32>} : memref<1x8x128xf32, #tpu.memory_space<vmem>>, vector<1x8x128xf32>,
    } else {
    }
    %c0 = arith.constant 0 : index
    %c0_1 = arith.constant 0 : index
    %c0_2 = arith.constant 0 : index
    %3 = vector.load %arg2[%c0, %c0_1, %c0_2] : memref<2x4x512xf32, #tpu.memory_space<vmem>>, vector<2x4x512xf32>
    %c0_3 = arith.constant 0 : index
    %c0_4 = arith.constant 0 : index
    %c0_5 = arith.constant 0 : index
    %4 = vector.load %arg3[%c0_3, %c0_4, %c0_5] : memref<2x1x512xf32, #tpu.memory_space<vmem>>, vector<2x1x512xf32>
    %cst = arith.constant dense<0.000000e+00> : vector<2x512xf32>
    %5 = vector.multi_reduction <add>, %3, %cst [1] : vector<2x4x512xf32> to vector<2x512xf32>
    %6 = vector.shape_cast %5 : vector<2x512xf32> to vector<2x1x512xf32>
    %7 = arith.mulf %6, %4 : vector<2x1x512xf32>
    %8 = vector.shape_cast %7 : vector<2x1x512xf32> to vector<1x2x1x512xf32>
    %cst_6 = arith.constant dense<0.000000e+00> : vector<1xf32>
    %9 = vector.multi_reduction <add>, %8, %cst_6 [1, 2, 3] : vector<1x2x1x512xf32> to vector<1xf32>
    %10 = vector.shape_cast %9 : vector<1xf32> to vector<1x1x1x1xf32>
    %11 = vector.extract %10[0, 0, 0, 0] : f32 from vector<1x1x1x1xf32>
    %12 = vector.broadcast %11 : f32 to vector<1x1x1xf32>
    %13 = vector.shape_cast %12 : vector<1x1x1xf32> to vector<1x1xf32>
    %14 = vector.shape_cast %4 : vector<2x1x512xf32> to vector<1x2x1x512xf32>
    %cst_7 = arith.constant dense<0.000000e+00> : vector<1xf32>
    %15 = vector.multi_reduction <add>, %14, %cst_7 [1, 2, 3] : vector<1x2x1x512xf32> to vector<1xf32>
    %16 = vector.shape_cast %15 : vector<1xf32> to vector<1x1x1x1xf32>
    %17 = vector.extract %16[0, 0, 0, 0] : f32 from vector<1x1x1x1xf32>
    %18 = vector.broadcast %17 : f32 to vector<1x1x1xf32>
    %19 = vector.shape_cast %18 : vector<1x1x1xf32> to vector<1x1xf32>
    %cst_8 = arith.constant 4.000000e+00 : f32
    %20 = vector.broadcast %cst_8 : f32 to vector<1x1xf32>
    %21 = arith.mulf %19, %20 : vector<1x1xf32>
    %22 = vector.shape_cast %6 : vector<2x1x512xf32> to vector<1x2x1x512xf32>
    %cst_9 = arith.constant dense<0.000000e+00> : vector<1xf32>
    %23 = vector.multi_reduction <add>, %22, %cst_9 [1, 2, 3] : vector<1x2x1x512xf32> to vector<1xf32>
    %24 = vector.shape_cast %23 : vector<1xf32> to vector<1x1x1x1xf32>
    %25 = vector.extract %24[0, 0, 0, 0] : f32 from vector<1x1x1x1xf32>
    %26 = vector.broadcast %25 : f32 to vector<1x1x1xf32>
    %27 = vector.shape_cast %26 : vector<1x1x1xf32> to vector<1x1xf32>
    %28 = math.log %3 : vector<2x4x512xf32>
    %cst_10 = arith.constant -1.000000e+02 : f32
    %29 = vector.broadcast %cst_10 : f32 to vector<2x4x512xf32>
    %30 = arith.maximumf %28, %29 : vector<2x4x512xf32>
    %cst_11 = arith.constant 1.000000e+00 : f32
    %31 = vector.broadcast %cst_11 : f32 to vector<2x4x512xf32>
    %32 = arith.subf %31, %3 : vector<2x4x512xf32>
    %33 = math.log %32 : vector<2x4x512xf32>
    %cst_12 = arith.constant -1.000000e+02 : f32
    %34 = vector.broadcast %cst_12 : f32 to vector<2x4x512xf32>
    %35 = arith.maximumf %33, %34 : vector<2x4x512xf32>
    %36 = vector.broadcast %4 : vector<2x1x512xf32> to vector<2x4x512xf32>
    %37 = arith.mulf %36, %30 : vector<2x4x512xf32>
    %cst_13 = arith.constant 1.000000e+00 : f32
    %38 = vector.broadcast %cst_13 : f32 to vector<2x1x512xf32>
    %39 = arith.subf %38, %4 : vector<2x1x512xf32>
    %40 = vector.broadcast %39 : vector<2x1x512xf32> to vector<2x4x512xf32>
    %41 = arith.mulf %40, %35 : vector<2x4x512xf32>
    %42 = arith.addf %37, %41 : vector<2x4x512xf32>
    %cst_14 = arith.constant 0.000000e+00 : f32
    %43 = vector.broadcast %cst_14 : f32 to vector<2x4x512xf32>
    %44 = arith.subf %43, %42 : vector<2x4x512xf32>
    %45 = vector.shape_cast %44 : vector<2x4x512xf32> to vector<1x2x4x512xf32>
    %cst_15 = arith.constant dense<0.000000e+00> : vector<1xf32>
    %46 = vector.multi_reduction <add>, %45, %cst_15 [1, 2, 3] : vector<1x2x4x512xf32> to vector<1xf32>
    %47 = vector.shape_cast %46 : vector<1xf32> to vector<1x1x1x1xf32>
    %48 = vector.extract %47[0, 0, 0, 0] : f32 from vector<1x1x1x1xf32>
    %49 = vector.broadcast %48 : f32 to vector<1x1x1xf32>
    %50 = vector.shape_cast %49 : vector<1x1x1xf32> to vector<1x1xf32>
    %cst_16 = arith.constant 2.500000e-01 : f32
    %51 = vector.broadcast %cst_16 : f32 to vector<2x1x512xf32>
    %52 = arith.mulf %6, %51 : vector<2x1x512xf32>
    %53 = vector.broadcast %52 : vector<2x1x512xf32> to vector<2x4x512xf32>
    %54 = arith.subf %3, %53 : vector<2x4x512xf32>
    %55 = arith.mulf %54, %54 : vector<2x4x512xf32>
    %56 = vector.shape_cast %55 : vector<2x4x512xf32> to vector<1x2x4x512xf32>
    %cst_17 = arith.constant dense<0.000000e+00> : vector<1xf32>
    %57 = vector.multi_reduction <add>, %56, %cst_17 [1, 2, 3] : vector<1x2x4x512xf32> to vector<1xf32>
    %58 = vector.shape_cast %57 : vector<1xf32> to vector<1x1x1x1xf32>
    %59 = vector.extract %58[0, 0, 0, 0] : f32 from vector<1x1x1x1xf32>
    %60 = vector.broadcast %59 : f32 to vector<1x1x1xf32>
    %61 = vector.shape_cast %60 : vector<1x1x1xf32> to vector<1x1xf32>
    %cst_18 = arith.constant 0.333333343 : f32
    %62 = vector.broadcast %cst_18 : f32 to vector<1x1xf32>
    %63 = arith.mulf %61, %62 : vector<1x1xf32>
    %c0_19 = arith.constant 0 : index
    %c0_20 = arith.constant 0 : index
    %c0_21 = arith.constant 0 : index
    %64 = vector.load %arg4[%c0_19, %c0_20, %c0_21] : memref<1x8x128xf32, #tpu.memory_space<vmem>>, vector<1x1x128xf32>
    %65 = vector.shape_cast %13 : vector<1x1xf32> to vector<1x1x1xf32>
    %66 = vector.broadcast %65 : vector<1x1x1xf32> to vector<1x1x128xf32>
    %67 = arith.addf %64, %66 : vector<1x1x128xf32>
    %c0_22 = arith.constant 0 : index
    %c0_23 = arith.constant 0 : index
    %c0_24 = arith.constant 0 : index
    %68 = vector.load %arg4[%c0_22, %c0_23, %c0_24] : memref<1x8x128xf32, #tpu.memory_space<vmem>>, vector<1x1x128xf32>
    tpu.vector_store %arg4[%c0_22, %c0_23, %c0_24], %67 {strides = array<i32>} : memref<1x8x128xf32, #tpu.memory_space<vmem>>, vector<1x1x128xf32>,
    %c0_25 = arith.constant 0 : index
    %c1 = arith.constant 1 : index
    %c0_26 = arith.constant 0 : index
    %69 = vector.load %arg4[%c0_25, %c1, %c0_26] : memref<1x8x128xf32, #tpu.memory_space<vmem>>, vector<1x1x128xf32>
    %70 = vector.shape_cast %27 : vector<1x1xf32> to vector<1x1x1xf32>
    %71 = vector.broadcast %70 : vector<1x1x1xf32> to vector<1x1x128xf32>
    %72 = arith.addf %69, %71 : vector<1x1x128xf32>
    %c0_27 = arith.constant 0 : index
    %c1_28 = arith.constant 1 : index
    %c0_29 = arith.constant 0 : index
    %73 = vector.load %arg4[%c0_27, %c1_28, %c0_29] : memref<1x8x128xf32, #tpu.memory_space<vmem>>, vector<1x1x128xf32>
    tpu.vector_store %arg4[%c0_27, %c1_28, %c0_29], %72 {strides = array<i32>} : memref<1x8x128xf32, #tpu.memory_space<vmem>>, vector<1x1x128xf32>,
    %c0_30 = arith.constant 0 : index
    %c2 = arith.constant 2 : index
    %c0_31 = arith.constant 0 : index
    %74 = vector.load %arg4[%c0_30, %c2, %c0_31] : memref<1x8x128xf32, #tpu.memory_space<vmem>>, vector<1x1x128xf32>
    %75 = vector.shape_cast %21 : vector<1x1xf32> to vector<1x1x1xf32>
    %76 = vector.broadcast %75 : vector<1x1x1xf32> to vector<1x1x128xf32>
    %77 = arith.addf %74, %76 : vector<1x1x128xf32>
    %c0_32 = arith.constant 0 : index
    %c2_33 = arith.constant 2 : index
    %c0_34 = arith.constant 0 : index
    %78 = vector.load %arg4[%c0_32, %c2_33, %c0_34] : memref<1x8x128xf32, #tpu.memory_space<vmem>>, vector<1x1x128xf32>
    tpu.vector_store %arg4[%c0_32, %c2_33, %c0_34], %77 {strides = array<i32>} : memref<1x8x128xf32, #tpu.memory_space<vmem>>, vector<1x1x128xf32>,
    %c0_35 = arith.constant 0 : index
    %c3 = arith.constant 3 : index
    %c0_36 = arith.constant 0 : index
    %79 = vector.load %arg4[%c0_35, %c3, %c0_36] : memref<1x8x128xf32, #tpu.memory_space<vmem>>, vector<1x1x128xf32>
    %80 = vector.shape_cast %50 : vector<1x1xf32> to vector<1x1x1xf32>
    %81 = vector.broadcast %80 : vector<1x1x1xf32> to vector<1x1x128xf32>
    %82 = arith.addf %79, %81 : vector<1x1x128xf32>
    %c0_37 = arith.constant 0 : index
    %c3_38 = arith.constant 3 : index
    %c0_39 = arith.constant 0 : index
    %83 = vector.load %arg4[%c0_37, %c3_38, %c0_39] : memref<1x8x128xf32, #tpu.memory_space<vmem>>, vector<1x1x128xf32>
    tpu.vector_store %arg4[%c0_37, %c3_38, %c0_39], %82 {strides = array<i32>} : memref<1x8x128xf32, #tpu.memory_space<vmem>>, vector<1x1x128xf32>,
    %c0_40 = arith.constant 0 : index
    %c4 = arith.constant 4 : index
    %c0_41 = arith.constant 0 : index
    %84 = vector.load %arg4[%c0_40, %c4, %c0_41] : memref<1x8x128xf32, #tpu.memory_space<vmem>>, vector<1x1x128xf32>
    %85 = vector.shape_cast %63 : vector<1x1xf32> to vector<1x1x1xf32>
    %86 = vector.broadcast %85 : vector<1x1x1xf32> to vector<1x1x128xf32>
    %87 = arith.addf %84, %86 : vector<1x1x128xf32>
    %c0_42 = arith.constant 0 : index
    %c4_43 = arith.constant 4 : index
    %c0_44 = arith.constant 0 : index
    %88 = vector.load %arg4[%c0_42, %c4_43, %c0_44] : memref<1x8x128xf32, #tpu.memory_space<vmem>>, vector<1x1x128xf32>
    tpu.vector_store %arg4[%c0_42, %c4_43, %c0_44], %87 {strides = array<i32>} : memref<1x8x128xf32, #tpu.memory_space<vmem>>, vector<1x1x128xf32>,
    return
  }
  func.func @transform_0(%arg0: i32, %arg1: i32) -> (i32, i32, i32) {
    %c1_i32 = arith.constant 1 : i32
    %0 = arith.muli %arg0, %c1_i32 : i32
    %1 = arith.addi %0, %arg1 : i32
    %c0_i32 = arith.constant 0 : i32
    %c0_i32_0 = arith.constant 0 : i32
    %c0_i32_1 = arith.constant 0 : i32
    return %c0_i32, %c0_i32_0, %1 : i32, i32, i32
  }
  func.func @transform_1(%arg0: i32, %arg1: i32) -> (i32, i32, i32) {
    %c1_i32 = arith.constant 1 : i32
    %0 = arith.muli %arg0, %c1_i32 : i32
    %1 = arith.addi %0, %arg1 : i32
    %c0_i32 = arith.constant 0 : i32
    %c0_i32_0 = arith.constant 0 : i32
    %c0_i32_1 = arith.constant 0 : i32
    return %c0_i32, %c0_i32_0, %1 : i32, i32, i32
  }
  func.func @transform_2(%arg0: i32, %arg1: i32) -> (i32, i32, i32) {
    %c0_i32 = arith.constant 0 : i32
    %c0_i32_0 = arith.constant 0 : i32
    %c0_i32_1 = arith.constant 0 : i32
    return %arg0, %c0_i32, %c0_i32_0 : i32, i32, i32
  }
}

</mosaic_0001>

<bundles_post_ra>
// kernel: all_loss.1
= control target key start
LH: loop header
LB: loop body
LE: loop exit
PB: predicated region body
PF: predicated region fallthrough
CT: control target
= control target key end

     0   :  { %v134_v0 = vlaneseq  ;;  %vm75_vm0 = vcmask 1043456   ;;  %vm182_vm1 = vcmask 1040384   ;;  %s766_s1 = inlined_call_operand.vmem [shape: f32[2,1,512], index: 1, kind: input, shape index: {}]   ;;  %s767_s0 = inlined_call_operand.vmem [shape: f32[2,4,512], index: 0, kind: input, shape index: {}]   ;;  %s768_s2 = inlined_call_operand.vmem [shape: f32[1,8,128], index: 2, kind: output, shape index: {}]  }
   0x1   :  { %v560_v1 = vld [vmem:[%s767_s0] sm:$0xff]  ;;  %v565_v3 = vld [vmem:[%s767_s0 + $0x8] sm:$0xff]  ;;  %v570_v4 = vld [vmem:[%s767_s0 + $0x10] sm:$0xff] }
   0x2   :  { %v135_v2 = vshrl.u32 %v134_v0, 7  ;;  %v575_v5 = vld [vmem:[%s767_s0 + $0x18] sm:$0xff]  ;;  %v67_v6 = vcombine.high %v560_v1, %v560_v1  ;;  %v76_v7 = vsel %vm75_vm0, %v560_v1, 0.0  ;;  %v584_v8 = vld [vmem:[%s766_s1] sm:$0xf]  ;;  %v68_v9 = vcombine.high %v565_v3, %v565_v3 }
   0x3   :  { %v69_v10 = vcombine.high %v570_v4, %v570_v4  ;;  %v70_v11 = vcombine.high %v575_v5, %v575_v5  ;;  %v77_v12 = vrot.slane %v76_v7, 4  ;;  %v595_v13 = vld [vmem:[%s766_s1 + $0x4] sm:$0xf]  ;;  %v90_v20 = vsel %vm75_vm0, %v565_v3, 0.0 }
   0x4   :  { %v597_v14 = vsub.s32 0, %v135_v2  ;;  %v599_v15 = vsub.s32 1, %v135_v2  ;;  %v601_v16 = vsub.s32 2, %v135_v2  ;;  %v603_v17 = vsub.s32 3, %v135_v2 }
   0x5   :  { %v78_v18 = vadd.f32 %v77_v12, %v76_v7  ;;  %v83_v19 = vsel %vm75_vm0, %v67_v6, 0.0  ;;  %v97_v21 = vsel %vm75_vm0, %v68_v9, 0.0  ;;  %v91_v41 = vrot.slane %v90_v20, 4 }
   0x6   :  { %v611_v22 = vrot.slane %v584_v8, %v597_v14  ;;  %v615_v23 = vrot.slane %v584_v8, %v599_v15  ;;  %v619_v24 = vrot.slane %v584_v8, %v601_v16  ;;  %v623_v25 = vrot.slane %v584_v8, %v603_v17 }
   0x7   :  { %v627_v26 = vrot.slane %v595_v13, %v597_v14  ;;  %v631_v27 = vrot.slane %v595_v13, %v599_v15  ;;  %v635_v28 = vrot.slane %v595_v13, %v601_v16  ;;  %v639_v29 = vrot.slane %v595_v13, %v603_v17 }
   0x8   :  { %v207_v30 = vsel %vm182_vm1, %v611_v22, 0.0  ;;  %v208_v31 = vsel %vm182_vm1, %v615_v23, 0.0  ;;  %v210_v32 = vsel %vm182_vm1, %v619_v24, 0.0  ;;  %v212_v33 = vsel %vm182_vm1, %v623_v25, 0.0 }
   0x9   :  { %v209_v34 = vadd.f32 %v208_v31, %v207_v30  ;;  %v214_v35 = vsel %vm182_vm1, %v627_v26, 0.0  ;;  %v216_v36 = vsel %vm182_vm1, %v631_v27, 0.0  ;;  %v218_v37 = vsel %vm182_vm1, %v635_v28, 0.0 }
   0xa   :  { %v220_v38 = vsel %vm182_vm1, %v639_v29, 0.0  ;;  %v79_v39 = vrot.slane %v78_v18, 2  ;;  %v84_v40 = vrot.slane %v83_v19, 4  ;;  %v98_v43 = vrot.slane %v97_v21, 4 }
   0xb   :  { %v211_v42 = vadd.f32 %v210_v32, %v209_v34  ;;  %v104_v44 = vsel %vm75_vm0, %v570_v4, 0.0  ;;  %v111_v45 = vsel %vm75_vm0, %v69_v10, 0.0  ;;  %v92_v48 = vadd.f32 %v91_v41, %v90_v20 }
   0xc   :  { %v80_v46 = vadd.f32 %v79_v39, %v78_v18  ;;  %v85_v47 = vadd.f32 %v84_v40, %v83_v19  ;;  %v105_v49 = vrot.slane %v104_v44, 4  ;;  %v99_v51 = vadd.f32 %v98_v43, %v97_v21 }
   0xd   :  { %v213_v50 = vadd.f32 %v212_v33, %v211_v42  ;;  %v112_v52 = vrot.slane %v111_v45, 4  ;;  %v118_v53 = vsel %vm75_vm0, %v575_v5, 0.0  ;;  %v93_v56 = vrot.slane %v92_v48, 2 }
   0xe   :  { %v81_v54 = vrot.slane %v80_v46, 1  ;;  %v86_v55 = vrot.slane %v85_v47, 2  ;;  %v106_v57 = vadd.f32 %v105_v49, %v104_v44  ;;  %v100_v59 = vrot.slane %v99_v51, 2 }
   0xf   :  { %v215_v58 = vadd.f32 %v214_v35, %v213_v50  ;;  %v113_v60 = vadd.f32 %v112_v52, %v111_v45  ;;  %v119_v61 = vrot.slane %v118_v53, 4  ;;  %v94_v0 = vadd.f32 %v93_v56, %v92_v48 }
  0x10   :  { %v82_v62 = vadd.f32 %v81_v54, %v80_v46  ;;  %v87_v63 = vadd.f32 %v86_v55, %v85_v47  ;;  %v107_v2 = vrot.slane %v106_v57, 2  ;;  %v101_v7 = vadd.f32 %v100_v59, %v99_v51 }
  0x11   :  { %v217_v6 = vadd.f32 %v216_v36, %v215_v58  ;;  %v114_v9 = vrot.slane %v113_v60, 2  ;;  %v120_v10 = vadd.f32 %v119_v61, %v118_v53  ;;  %v95_v18 = vrot.slane %v94_v0, 1 }
  0x12   :  { %v88_v12 = vrot.slane %v87_v63, 1  ;;  %v108_v19 = vadd.f32 %v107_v2, %v106_v57  ;;  %v125_v20 = vsel %vm75_vm0, %v70_v11, 0.0  ;;  %v102_v30 = vrot.slane %v101_v7, 1 }
  0x13   :  { %v219_v21 = vadd.f32 %v218_v37, %v217_v6  ;;  %v115_v31 = vadd.f32 %v114_v9, %v113_v60  ;;  %v121_v32 = vrot.slane %v120_v10, 2  ;;  %v96_v34 = vadd.f32 %v95_v18, %v94_v0 }
  0x14   :  { %v89_v33 = vadd.f32 %v88_v12, %v87_v63  ;;  %v109_v35 = vrot.slane %v108_v19, 1  ;;  %v126_v39 = vrot.slane %v125_v20, 4  ;;  %v103_v41 = vadd.f32 %v102_v30, %v101_v7 }
  0x15   :  { %v221_v40 = vadd.f32 %v220_v38, %v219_v21  ;;  %v116_v42 = vrot.slane %v115_v31, 1  ;;  %v122_v36 = vadd.f32 %v121_v32, %v120_v10  ;;  %v174_v45 = vmul.f32 %v611_v22, %v82_v62 }
  0x16   :  { %v110_v43 = vadd.f32 %v109_v35, %v108_v19  ;;  %v127_v44 = vadd.f32 %v126_v39, %v125_v20  ;;  %v175_v46 = vmul.f32 %v615_v23, %v89_v33  ;;  %v176_v47 = vmul.f32 %v619_v24, %v96_v34 }
  0x17   :  { %222 = vadd.xlane.f32.xlu0 %v221_v40  ;;  %v117_v11 = vadd.f32 %v116_v42, %v115_v31  ;;  %v123_v37 = vrot.slane %v122_v36, 1  ;;  %v177_v48 = vmul.f32 %v623_v25, %v103_v41  ;;  %v183_v38 = vsel %vm182_vm1, %v174_v45, 0.0 }
  0x18   :  { %v128_v49 = vrot.slane %v127_v44, 2  ;;  %v178_v50 = vmul.f32 %v627_v26, %v110_v43  ;;  %v184_v51 = vsel %vm182_vm1, %v175_v46, 0.0  ;;  %v186_v55 = vsel %vm182_vm1, %v176_v47, 0.0 }
  0x19   :  { %v124_v52 = vadd.f32 %v123_v37, %v122_v36  ;;  %v179_v53 = vmul.f32 %v631_v27, %v117_v11  ;;  %v185_v54 = vadd.f32 %v184_v51, %v183_v38  ;;  %v188_v57 = vsel %vm182_vm1, %v177_v48, 0.0 }
  0x1a   :  { %v129_v56 = vadd.f32 %v128_v49, %v127_v44  ;;  %v233_v58 = vsel %vm182_vm1, %v82_v62, 0.0  ;;  %v190_v61 = vsel %vm182_vm1, %v178_v50, 0.0  ;;  %v234_v63 = vsel %vm182_vm1, %v89_v33, 0.0 }
  0x1b   :  { %v180_v59 = vmul.f32 %v635_v28, %v124_v52  ;;  %v187_v60 = vadd.f32 %v186_v55, %v185_v54  ;;  %v192_v2 = vsel %vm182_vm1, %v179_v53, 0.0  ;;  %v235_v6 = vadd.f32 %v234_v63, %v233_v58 }
  0x1c   :  { %v130_v0 = vrot.slane %v129_v56, 1  ;;  %v236_v7 = vsel %vm182_vm1, %v96_v34, 0.0  ;;  %v238_v12 = vsel %vm182_vm1, %v103_v41, 0.0  ;;  %v240_v18 = vsel %vm182_vm1, %v110_v43, 0.0 }
  0x1d   :  { %v189_v9 = vadd.f32 %v188_v57, %v187_v60  ;;  %v194_v10 = vsel %vm182_vm1, %v180_v59, 0.0  ;;  %v237_v20 = vadd.f32 %v236_v7, %v235_v6  ;;  %v242_v21 = vsel %vm182_vm1, %v117_v11, 0.0 }
  0x1e   :  { %v131_v19 = vadd.f32 %v130_v0, %v129_v56  ;;  %v409_v30 = vmul.f32 0.25, %v82_v62  ;;  %v410_v32 = vmul.f32 0.25, %v89_v33  ;;  %v411_v35 = vmul.f32 0.25, %v96_v34 }
  0x1f   :  { %v191_v31 = vadd.f32 %v190_v61, %v189_v9  ;;  %v412_v39 = vmul.f32 0.25, %v103_v41  ;;  %v239_v42 = vadd.f32 %v238_v12, %v237_v20  ;;  %v244_v36 = vsel %vm182_vm1, %v124_v52, 0.0 }
  0x20   :  { %v181_v40 = vmul.f32 %v639_v29, %v131_v19  ;;  %v413_v44 = vmul.f32 0.25, %v110_v43  ;;  %v414_v46 = vmul.f32 0.25, %v117_v11  ;;  %v415_v37 = vmul.f32 0.25, %v124_v52 }
  0x21   :  { %v193_v45 = vadd.f32 %v192_v2, %v191_v31  ;;  %v416_v47 = vmul.f32 0.25, %v131_v19  ;;  %v241_v49 = vadd.f32 %v240_v18, %v239_v42  ;;  %v425_v50 = vcombine.low %v409_v30, %v410_v32 }
  0x22   :  { %v196_v48 = vsel %vm182_vm1, %v181_v40, 0.0  ;;  %v426_v38 = vcombine.low %v411_v35, %v412_v39  ;;  %v427_v51 = vcombine.low %v413_v44, %v414_v46  ;;  %525 = vlog2.f32 %v560_v1 }
  0x23   :  { %v195_v62 = vadd.f32 %v194_v10, %v193_v45  ;;  %v428_v33 = vcombine.low %v415_v37, %v416_v47  ;;  %v243_v34 = vadd.f32 %v242_v21, %v241_v49  ;;  %v433_v41 = vsub.f32 %v560_v1, %v425_v50 }
  0x24   :  { %v434_v53 = vsub.f32 %v565_v3, %v426_v38  ;;  %527 = vlog2.f32 %v565_v3  ;;  %v246_v11 = vsel %vm182_vm1, %v131_v19, 0.0  ;;  %v435_v52 = vsub.f32 %v570_v4, %v427_v51 }
  0x25   :  { %v197_v43 = vadd.f32 %v196_v48, %v195_v62  ;;  %529 = vlog2.f32 %v570_v4  ;;  %v245_v54 = vadd.f32 %v244_v36, %v243_v34  ;;  %v437_v55 = vmul.f32 %v433_v41, %v433_v41 }
  0x26   :  { %v438_v56 = vmul.f32 %v434_v53, %v434_v53  ;;  %531 = vlog2.f32 %v575_v5  ;;  %v436_v57 = vsub.f32 %v575_v5, %v428_v33  ;;  %v439_v58 = vmul.f32 %v435_v52, %v435_v52 }
  0x27   :  { %198 = vadd.xlane.f32.xlu0 %v197_v43  ;;  %v269_v59 = vsub.f32 1.0, %v560_v1  ;;  %v247_v60 = vadd.f32 %v246_v11, %v245_v54  ;;  %v445_v61 = vcombine.high %v437_v55, %v437_v55  ;;  %v453_v0 = vsel %vm75_vm0, %v437_v55, 0.0 }
  0x28   :  { %v446_v63 = vcombine.high %v438_v56, %v438_v56  ;;  %v270_v2 = vsub.f32 1.0, %v565_v3  ;;  %v456_v7 = vsel %vm75_vm0, %v438_v56, 0.0  ;;  %v271_v9 = vsub.f32 1.0, %v570_v4 }
  0x29   :  { %248 = vadd.xlane.f32.xlu1 %v247_v60  ;;  %v454_v6 = vsel %vm75_vm0, %v445_v61, 0.0  ;;  %v272_v12 = vsub.f32 1.0, %v575_v5  ;;  %v440_v18 = vmul.f32 %v436_v57, %v436_v57  ;;  %v447_v19 = vcombine.high %v439_v58, %v439_v58 }
  0x2a   :  { %v455_v10 = vadd.f32 %v454_v6, %v453_v0  ;;  %v458_v1 = vsel %vm75_vm0, %v446_v63, 0.0  ;;  %533 = vlog2.f32 %v269_v59  ;;  %v460_v21 = vsel %vm75_vm0, %v439_v58, 0.0 }
  0x2b   :  { %535 = vlog2.f32 %v270_v2  ;;  %v448_v31 = vcombine.high %v440_v18, %v440_v18  ;;  %v462_v32 = vsel %vm75_vm0, %v447_v19, 0.0  ;;  %v464_v40 = vsel %vm75_vm0, %v440_v18, 0.0 }
  0x2c   :  { %v457_v20 = vadd.f32 %v456_v7, %v455_v10  ;;  %537 = vlog2.f32 %v271_v9  ;;  %v305_v46 = vsub.f32 1.0, %v584_v8  ;;  %v306_v38 = vsub.f32 1.0, %v595_v13 }
  0x2d   :  { %539 = vlog2.f32 %v272_v12  ;;  %v466_v37 = vsel %vm75_vm0, %v448_v31, 0.0 }
  0x2e   :  { %v459_v3 = vadd.f32 %v458_v1, %v457_v20  ;;  %v312_v34 = vrot.slane %v305_v46, %v597_v14  ;;  %v316_v41 = vrot.slane %v305_v46, %v599_v15  ;;  %v320_v53 = vrot.slane %v305_v46, %v601_v16 }
  0x2f   :  { %v526_v30 = vpop.eup %525  ;;  %v324_v52 = vrot.slane %v305_v46, %v603_v17  ;;  %v328_v54 = vrot.slane %v306_v38, %v597_v14  ;;  %v332_v13 = vrot.slane %v306_v38, %v599_v15  ;;  %v336_v57 = vrot.slane %v306_v38, %v601_v16 }
  0x30   :  { %v461_v35 = vadd.f32 %v460_v21, %v459_v3  ;;  %v258_v39 = vmul.f32 0.6931472, %v526_v30  ;;  %v340_v58 = vrot.slane %v306_v38, %v603_v17 }
  0x31   :  { %v528_v4 = vpop.eup %527 }
  0x32   :  { %v530_v5 = vpop.eup %529  ;;  %v260_v42 = vmul.f32 0.6931472, %v528_v4  ;;  %v463_v44 = vadd.f32 %v462_v32, %v461_v35  ;;  %v265_v47 = vmax.f32 %v258_v39, -100.0 }
  0x33   :  { %v532_v36 = vpop.eup %531  ;;  %v262_v45 = vmul.f32 0.6931472, %v530_v5 }
  0x34   :  { %v465_v48 = vadd.f32 %v464_v40, %v463_v44  ;;  %v264_v49 = vmul.f32 0.6931472, %v532_v36  ;;  %v266_v50 = vmax.f32 %v260_v42, -100.0  ;;  %v289_v33 = vcombine.high %v265_v47, %v265_v47 }
  0x35   :  { %v267_v51 = vmax.f32 %v262_v45, -100.0  ;;  %v297_v63 = vmul.f32 %v265_v47, %v611_v22 }
  0x36   :  { %v467_v62 = vadd.f32 %v466_v37, %v465_v48  ;;  %v268_v8 = vmax.f32 %v264_v49, -100.0  ;;  %v290_v11 = vcombine.high %v266_v50, %v266_v50  ;;  %v299_v0 = vmul.f32 %v266_v50, %v619_v24 }
  0x37   :  { %v534_v43 = vpop.eup %533  ;;  %v291_v61 = vcombine.high %v267_v51, %v267_v51  ;;  %v298_v14 = vmul.f32 %v289_v33, %v615_v23  ;;  %v301_v9 = vmul.f32 %v267_v51, %v627_v26 }
  0x38   :  { %468 = vadd.xlane.f32.xlu0 %v467_v62  ;;  %v536_v55 = vpop.eup %535  ;;  %v274_v56 = vmul.f32 0.6931472, %v534_v43  ;;  %v292_v12 = vcombine.high %v268_v8, %v268_v8  ;;  %v300_v16 = vmul.f32 %v290_v11, %v623_v25  ;;  %v303_v18 = vmul.f32 %v268_v8, %v635_v28 }
  0x39   :  { %v538_v59 = vpop.eup %537  ;;  %v276_v60 = vmul.f32 0.6931472, %v536_v55  ;;  %v302_v24 = vmul.f32 %v291_v61, %v631_v27 }
  0x3a   :  { %v540_v2 = vpop.eup %539  ;;  %v278_v6 = vmul.f32 0.6931472, %v538_v59  ;;  %v281_v7 = vmax.f32 %v274_v56, -100.0  ;;  %v304_v28 = vmul.f32 %v292_v12, %v639_v29 }
  0x3b   :  { %v280_v10 = vmul.f32 0.6931472, %v540_v2  ;;  %v282_v15 = vmax.f32 %v276_v60, -100.0 }
  0x3c   :  { %v283_v17 = vmax.f32 %v278_v6, -100.0  ;;  %v353_v19 = vcombine.high %v281_v7, %v281_v7  ;;  %v361_v1 = vmul.f32 %v312_v34, %v281_v7 }
  0x3d   :  { %v284_v22 = vmax.f32 %v280_v10, -100.0  ;;  %v354_v20 = vcombine.high %v282_v15, %v282_v15  ;;  %v363_v21 = vmul.f32 %v320_v53, %v282_v15 }
  0x3e   :  { %v355_v3 = vcombine.high %v283_v17, %v283_v17  ;;  %v362_v30 = vmul.f32 %v353_v19, %v316_v41  ;;  %v365_v23 = vmul.f32 %v328_v54, %v283_v17  ;;  %v369_v31 = vadd.f32 %v361_v1, %v297_v63 }
  0x3f   :  { %v356_v26 = vcombine.high %v284_v22, %v284_v22  ;;  %v364_v32 = vmul.f32 %v354_v20, %v324_v52  ;;  %v367_v4 = vmul.f32 %v336_v57, %v284_v22  ;;  %v371_v35 = vadd.f32 %v363_v21, %v299_v0 }
  0x40   :  { %v366_v39 = vmul.f32 %v355_v3, %v332_v13  ;;  %v370_v25 = vadd.f32 %v362_v30, %v298_v14  ;;  %v373_v5 = vadd.f32 %v365_v23, %v301_v9  ;;  %v377_v40 = vsub.f32 0.0, %v369_v31 }
  0x41   :  { %v372_v42 = vadd.f32 %v364_v32, %v300_v16  ;;  %v379_v36 = vsub.f32 0.0, %v371_v35  ;;  %v368_v44 = vmul.f32 %v356_v26, %v340_v58  ;;  %v375_v47 = vadd.f32 %v367_v4, %v303_v18 }
  0x42   :  { %v374_v27 = vadd.f32 %v366_v39, %v302_v24  ;;  %v378_v45 = vsub.f32 0.0, %v370_v25  ;;  %v385_v46 = vsel %vm75_vm0, %v377_v40, 0.0  ;;  %v381_v48 = vsub.f32 0.0, %v373_v5 }
  0x43   :  { %v380_v37 = vsub.f32 0.0, %v372_v42  ;;  %v388_v50 = vsel %vm75_vm0, %v379_v36, 0.0  ;;  %v376_v62 = vadd.f32 %v368_v44, %v304_v28  ;;  %v383_v34 = vsub.f32 0.0, %v375_v47 }
  0x44   :  { %v386_v49 = vsel %vm75_vm0, %v378_v45, 0.0  ;;  %v382_v51 = vsub.f32 0.0, %v374_v27  ;;  %v392_v41 = vsel %vm75_vm0, %v381_v48, 0.0  ;;  %v541_v57 = vmov 0.0  }
  0x45   :  { %v387_v38 = vadd.f32 %v386_v49, %v385_v46  ;;  %v390_v33 = vsel %vm75_vm0, %v380_v37, 0.0  ;;  %v384_v43 = vsub.f32 0.0, %v376_v62  ;;  %v396_v52 = vsel %vm75_vm0, %v383_v34, 0.0  ;;  %56 = vst [vmem:[%s768_s2] sm:$0xff] %v541_v57 }
  0x46   :  { %v394_v8 = vsel %vm75_vm0, %v382_v51, 0.0 }
  0x47   :  { %v389_v29 = vadd.f32 %v388_v50, %v387_v38  ;;  %v398_v55 = vsel %vm75_vm0, %v384_v43, 0.0 }
  0x49   :  { %v391_v53 = vadd.f32 %v390_v33, %v389_v29 }
  0x4b   :  { %v393_v11 = vadd.f32 %v392_v41, %v391_v53 }
  0x4c   :  { %v479_v28 = vld [vmem:[%s768_s2] sm:$0x1]  ;;  %v487_v27 = vld [vmem:[%s768_s2 + $0x2] sm:$0x1]  ;;  %v483_v45 = vld [vmem:[%s768_s2 + $0x1] sm:$0x1] }
  0x4d   :  { %v395_v54 = vadd.f32 %v394_v8, %v393_v11  ;;  %v490_v49 = vld [vmem:[%s768_s2 + $0x3] sm:$0x1]  ;;  %v494_v51 = vld [vmem:[%s768_s2 + $0x4] sm:$0x1] }
  0x4f   :  { %v397_v56 = vadd.f32 %v396_v52, %v395_v54 }
  0x51   :  { %v399_v13 = vadd.f32 %v398_v55, %v397_v56 }
  0x53   :  { %400 = vadd.xlane.f32.xlu1 %v399_v13 }
  0xa0   :  { %v223_v58 = vpop.xlane.xlu0 %222 }
  0xa1   :  { %v224_v59 = vrot.slane %v223_v58, 4 }
  0xa3   :  { %v225_v60 = vadd.f32 %v224_v59, %v223_v58 }
  0xa5   :  { %v226_v61 = vrot.slane %v225_v60, 2 }
  0xa7   :  { %v227_v14 = vadd.f32 %v226_v61, %v225_v60 }
  0xa9   :  { %v228_v16 = vrot.slane %v227_v14, 1 }
  0xab   :  { %v229_v1 = vadd.f32 %v228_v16, %v227_v14 }
  0xb0   :  { %v199_v63 = vpop.xlane.xlu0 %198 }
  0xb1   :  { %v200_v0 = vrot.slane %v199_v63, 4 }
  0xb2   :  { %v249_v6 = vpop.xlane.xlu1 %248 }
  0xb3   :  { %v201_v2 = vadd.f32 %v200_v0, %v199_v63  ;;  %v250_v7 = vrot.slane %v249_v6, 4 }
  0xb5   :  { %v202_v9 = vrot.slane %v201_v2, 2  ;;  %v251_v10 = vadd.f32 %v250_v7, %v249_v6 }
  0xb7   :  { %v203_v15 = vadd.f32 %v202_v9, %v201_v2  ;;  %v252_v12 = vrot.slane %v251_v10, 2 }
  0xb9   :  { %v204_v17 = vrot.slane %v203_v15, 1  ;;  %v253_v18 = vadd.f32 %v252_v12, %v251_v10 }
  0xbb   :  { %v205_v19 = vadd.f32 %v204_v17, %v203_v15  ;;  %v254_v22 = vrot.slane %v253_v18, 1 }
  0xbd   :  { %510 = vpush %v205_v19  ;;  %v255_v24 = vadd.f32 %v254_v22, %v253_v18 }
  0xbe   :  { %512 = vpush %v229_v1 }
  0xbf   :  { %514 = vpush %v255_v24 }
  0xc1   :  { %v469_v20 = vpop.xlane.xlu0 %468 }
  0xc2   :  { %v470_v21 = vrot.slane %v469_v20, 4 }
  0xc4   :  { %v471_v3 = vadd.f32 %v470_v21, %v469_v20 }
  0xc6   :  { %v472_v30 = vrot.slane %v471_v3, 2 }
  0xc8   :  { %v473_v32 = vadd.f32 %v472_v30, %v471_v3 }
  0xca   :  { %v474_v39 = vrot.slane %v473_v32, 1 }
  0xcc   :  { %v475_v40 = vadd.f32 %v474_v39, %v473_v32 }
  0xdc   :  { %v401_v23 = vpop.xlane.xlu1 %400 }
  0xdd   :  { %v402_v31 = vrot.slane %v401_v23, 4 }
  0xdf   :  { %v403_v26 = vadd.f32 %v402_v31, %v401_v23 }
  0xe1   :  { %v404_v4 = vrot.slane %v403_v26, 2 }
  0xe3   :  { %v405_v35 = vadd.f32 %v404_v4, %v403_v26 }
  0xe5   :  { %v406_v25 = vrot.slane %v405_v35, 1 }
  0xe7   :  { %v407_v5 = vadd.f32 %v406_v25, %v405_v35 }
  0xe9   :  { %516 = vpush %v407_v5 }
  0xea   :  { %518 = vpush %v475_v40 }
  0xee   :  { %s511_s23 = spop %510 }
  0xef   :  { %v480_v42 = vstv %s511_s23  ;;  %s513_s24 = spop %512 }
  0xf0   :  { %v481_v36 = vadd.f32 %v480_v42, %v479_v28  ;;  %v231_v44 = vstv %s513_s24  ;;  %s515_s29 = spop %514 }
  0xf1   :  { %v232_v46 = vmul.f32 4.0, %v231_v44  ;;  %v484_v37 = vstv %s515_s29 }
  0xf2   :  { %482 = vst [vmem:[%s768_s2] sm:$0x1] %v481_v36  ;;  %v485_v48 = vadd.f32 %v484_v37, %v483_v45 }
  0xf3   :  { %v488_v47 = vadd.f32 %v487_v27, %v232_v46 }
  0xf4   :  { %486 = vst [vmem:[%s768_s2 + $0x1] sm:$0x1] %v485_v48 }
  0xf5   :  { %489 = vst [vmem:[%s768_s2 + $0x2] sm:$0x1] %v488_v47 }
 0x11a   :  { %s517_s10 = spop %516 }
 0x11b   :  { %v491_v50 = vstv %s517_s10  ;;  %s519_s11 = spop %518 }
 0x11c   :  { %v492_v38 = vadd.f32 %v491_v50, %v490_v49  ;;  %v477_v62 = vstv %s519_s11 }
 0x11d   :  { %v478_v33 = vmul.f32 0.33333334, %v477_v62 }
 0x11e   :  { %493 = vst [vmem:[%s768_s2 + $0x3] sm:$0x1] %v492_v38 }
 0x11f   :  { %v495_v29 = vadd.f32 %v494_v51, %v478_v33 }
 0x121   :  { %496 = vst [vmem:[%s768_s2 + $0x4] sm:$0x1] %v495_v29 }

</bundles_post_ra>
